<compile_context>
chip_gen: v5e
topology: v5e:2x2
jax: 0.10.0
libtpu: 0.0.40
codegen_flags: <defaults>
</compile_context>

<pallas_src>
import jax
import jax.numpy as jnp
from jax.experimental import pallas as pl
from jax.experimental.pallas import tpu as pltpu


def _round_up(x, m):
    return ((x + m - 1) // m) * m


# ---------------------------------------------------------------------------
# Kernel
# ---------------------------------------------------------------------------
def _resnet_block_kernel(x_ref, w1_ref, b1_ref, w2_ref, b2_ref, o_ref, acc_ref):
    """Row tile [tn, Hp], hidden-column tile k of
           out = (relu(x @ W1 + b1) @ W2 + b2) + x
       accumulated over the hidden-column grid axis:
           acc += relu(x @ W1[:, k] + b1[k]) @ W2[k, :]
       (exact because ReLU is elementwise per hidden column)."""
    k = pl.program_id(1)

    @pl.when(k == 0)
    def _():
        acc_ref[...] = jnp.zeros_like(acc_ref)

    x = x_ref[...]                                           # [tn, Hp]
    # Linear 1 (column slice k): bf16 MXU inputs, f32 accumulate.
    h = jnp.dot(x.astype(jnp.bfloat16), w1_ref[...],
                preferred_element_type=jnp.float32)          # [tn, tk]
    h = jnp.maximum(h + b1_ref[...], 0.0)                    # bias + ReLU (f32)
    # Linear 2 (row slice k of W2): accumulate partial product in f32 scratch.
    acc_ref[...] += jnp.dot(h.astype(jnp.bfloat16), w2_ref[...],
                            preferred_element_type=jnp.float32)

    @pl.when(k == pl.num_programs(1) - 1)
    def _():
        # Final bias + residual add in f32, then cast to the output dtype.
        o_ref[...] = (acc_ref[...] + b2_ref[...]
                      + x.astype(jnp.float32)).astype(o_ref.dtype)


# ---------------------------------------------------------------------------
# Tiling heuristics
# ---------------------------------------------------------------------------
_WEIGHT_VMEM_BUDGET = 24 << 20   # VMEM bytes we allow the bf16 weights to use


def _pick_tk(Hp):
    """Hidden-column tile.  tk == Hp => weights stay fully resident."""
    if 2 * Hp * Hp * 2 <= _WEIGHT_VMEM_BUDGET:
        return Hp
    # Stream double-buffered [Hp, tk] / [tk, Hp] bf16 slices: 8*Hp*tk bytes.
    tk_max = max(128, (_WEIGHT_VMEM_BUDGET // (8 * Hp)) // 128 * 128)
    units = Hp // 128
    best = 128
    for d in range(1, units + 1):          # tk must divide Hp exactly
        if units % d == 0 and d * 128 <= tk_max:
            best = d * 128
    return best


def _pick_tn(N, Hp):
    """Row tile.  Big for tiny H, bounded for large H, >=2 tiles for megacore."""
    if Hp <= 256:
        cap = 2048          # tiny H: amortize per-grid-step overhead
    elif Hp <= 1024:
        cap = 512
    else:
        cap = 256           # large H: bound in-kernel temporaries (v7x 64 MiB)
    if N > 8:               # give both v7x TensorCores at least one row tile
        cap = min(cap, _round_up(-(-N // 2), 8))
    return max(8, min(cap, _round_up(N, 8)))


def _spec(shape, index_map, *, single=False):
    """BlockSpec; single-buffer grid-invariant operands when supported."""
    if single and hasattr(pl, "Buffered"):
        try:
            return pl.BlockSpec(shape, index_map, pipeline_mode=pl.Buffered(1))
        except TypeError:   # older jax without pipeline_mode kwarg
            pass
    return pl.BlockSpec(shape, index_map)


# ---------------------------------------------------------------------------
# Wrapper
# ---------------------------------------------------------------------------
def resnet_block(x, w1, b1, w2, b2, *, out_dtype=None):
    """x: [N, H]; w1, w2: [H, H] stored (in, out); b1, b2: [H].
       Returns (relu(x @ w1 + b1) @ w2 + b2) + x  with shape [N, H]."""
    N, H = x.shape
    out_dtype = x.dtype if out_dtype is None else out_dtype
    Hp = _round_up(H, 128)                 # lane-dense last dim

    tk = _pick_tk(Hp)
    tn = _pick_tn(N, Hp)
    n_k = Hp // tk
    n_rows = pl.cdiv(N, tn)
    single_w = (n_k == 1)                  # weights grid-invariant -> 1 buffer

    # Lane (H) padding only; padded columns are exact zeros so the valid
    # region of the output is unchanged.  N is NOT padded (ragged row tiles
    # are masked by Pallas on writeback).
    if Hp != H:
        x_p = jnp.pad(x, ((0, 0), (0, Hp - H)))
        pad_w = ((0, Hp - H), (0, Hp - H))
        w1_p = jnp.pad(w1, pad_w).astype(jnp.bfloat16)
        w2_p = jnp.pad(w2, pad_w).astype(jnp.bfloat16)
        b1_p = jnp.pad(b1, (0, Hp - H)).reshape(1, Hp).astype(jnp.float32)
        b2_p = jnp.pad(b2, (0, Hp - H)).reshape(1, Hp).astype(jnp.float32)
    else:
        x_p = x
        w1_p = w1.astype(jnp.bfloat16)
        w2_p = w2.astype(jnp.bfloat16)
        b1_p = b1.reshape(1, Hp).astype(jnp.float32)
        b2_p = b2.reshape(1, Hp).astype(jnp.float32)

    # --- VMEM budget: double-buffered x/out tiles + weight slices + scratch
    #     + in-kernel temporaries (f32 h, bf16 casts of x and h) + headroom.
    isz_x = jnp.dtype(x.dtype).itemsize
    isz_o = jnp.dtype(out_dtype).itemsize
    n_buf_w = 1 if single_w else 2
    vmem_bytes = (
        2 * tn * Hp * isz_x                  # x tiles (double-buffered)
        + 2 * tn * Hp * isz_o                # out tiles (double-buffered)
        + n_buf_w * 2 * Hp * tk * 2          # bf16 w1 + w2 slices
        + 4 * (tk + Hp) * 2                  # biases
        + tn * Hp * 4                        # f32 accumulator scratch
        + tn * (4 * tk + 2 * Hp + 2 * tk)    # temporaries: h f32 + bf16 casts
    )
    try:
        phys_vmem = pltpu.get_tpu_info().vmem_capacity_bytes
    except Exception:
        phys_vmem = 64 << 20                 # conservative (v7x per-TC VMEM)
    vmem_limit = int(min(max(vmem_bytes * 5 // 4 + (2 << 20), 32 << 20),
                         phys_vmem * 9 // 10))

    w_passes = 1 if single_w else n_rows     # resident weights DMA'd only once
    cost = pl.CostEstimate(
        flops=2 * 2 * N * Hp * Hp,           # two [N,Hp]x[Hp,Hp] matmuls
        transcendentals=0,
        bytes_accessed=(N * Hp * (isz_x + isz_o)
                        + w_passes * 2 * Hp * Hp * 2
                        + 2 * Hp * 4),
    )

    out_p = pl.pallas_call(
        _resnet_block_kernel,
        out_shape=jax.ShapeDtypeStruct((N, Hp), out_dtype),
        grid_spec=pltpu.PrefetchScalarGridSpec(
            num_scalar_prefetch=0,
            grid=(n_rows, n_k),
            in_specs=[
                # Activations: pipelined / double-buffered over row tiles,
                # resident across the hidden-column (k) axis.
                pl.BlockSpec((tn, Hp), lambda i, k: (i, 0)),            # x
                # Weights/biases: fully resident + single-buffered when they
                # fit (n_k == 1), otherwise streamed k-slices (double-buffered
                # so the DMA hides behind the MXU).
                _spec((Hp, tk), lambda i, k: (0, k), single=single_w),  # w1
                _spec((1, tk), lambda i, k: (0, k), single=single_w),   # b1
                _spec((tk, Hp), lambda i, k: (k, 0), single=single_w),  # w2
                _spec((1, Hp), lambda i, k: (0, 0), single=True),       # b2
            ],
            out_specs=pl.BlockSpec((tn, Hp), lambda i, k: (i, 0)),
            scratch_shapes=[pltpu.VMEM((tn, Hp), jnp.float32)],          # acc
        ),
        compiler_params=pltpu.CompilerParams(
            # Row tiles independent -> shard across v7x's two TensorCores;
            # hidden-column axis is a reduction -> arbitrary.
            dimension_semantics=("parallel", "arbitrary"),
            vmem_limit_bytes=vmem_limit),
        cost_estimate=cost,
    )(x_p, w1_p, b1_p, w2_p, b2_p)

    if Hp != H:
        out_p = out_p[:, :H]
    return out_p


# ---------------------------------------------------------------------------
# Demo / correctness check
# ---------------------------------------------------------------------------
def _torch_linear_init(key, fan_in, fan_out):
    """Deterministic init matching torch.nn.Linear.reset_parameters bounds."""
    kw, kb = jax.random.split(key)
    limit_w = (1.0 / fan_in) ** 0.5 * (3.0 ** 0.5)   # kaiming_uniform(a=sqrt(5))
    limit_b = (1.0 / fan_in) ** 0.5
    # weight stored as [in, out] (transposed vs. torch's [out, in])
    w = jax.random.uniform(kw, (fan_in, fan_out), jnp.float32,
                           minval=-limit_w, maxval=limit_w)
    b = jax.random.uniform(kb, (fan_out,), jnp.float32,
                           minval=-limit_b, maxval=limit_b)
    return w, b


if __name__ == "__main__":
    key = jax.random.PRNGKey(0)
    k_x, k_l1, k_l2 = jax.random.split(key, 3)

    batch, seq, hidden = 2, 8, 32
    x = jax.random.normal(k_x, (batch, seq, hidden), jnp.float32)

    w1, b1 = _torch_linear_init(k_l1, hidden, hidden)
    w2, b2 = _torch_linear_init(k_l2, hidden, hidden)

    x2d = x.reshape(batch * seq, hidden)             # [N, H] layout for kernel
    out2d = resnet_block(x2d, w1, b1, w2, b2)
    out = out2d.reshape(batch, seq, hidden)
    jax.block_until_ready(out)

    # Pure-JAX reference with the same bf16-MXU / f32-accumulate recipe.
    # NOTE: bf16 matmul inputs differ slightly from torch's f32 nn.Linear; use
    # f32 weights in the kernel if bit-level parity with PyTorch is required.
    xb = x2d.astype(jnp.bfloat16)
    h = jnp.maximum(jnp.dot(xb, w1.astype(jnp.bfloat16),
                            preferred_element_type=jnp.float32) + b1, 0.0)
    y = jnp.dot(h.astype(jnp.bfloat16), w2.astype(jnp.bfloat16),
                preferred_element_type=jnp.float32) + b2
    ref = y + x2d
    assert jnp.allclose(out2d, ref, atol=1e-3, rtol=1e-3), \
        float(jnp.max(jnp.abs(out2d - ref)))

    print("KERNEL_OK")
</pallas_src>

<mosaic_0001>
module attributes {stable_mosaic.version = 11 : i64} {
  func.func @_resnet_block_kernel(%arg0: i32, %arg1: i32, %arg2: memref<8x128xf32, #tpu.memory_space<vmem>>, %arg3: memref<128x128xbf16, #tpu.memory_space<vmem>>, %arg4: memref<1x128xf32, #tpu.memory_space<vmem>>, %arg5: memref<128x128xbf16, #tpu.memory_space<vmem>>, %arg6: memref<1x128xf32, #tpu.memory_space<vmem>>, %arg7: memref<8x128xf32, #tpu.memory_space<vmem>>, %arg8: memref<8x128xf32, #tpu.memory_space<vmem>>) attributes {dimension_semantics = [#tpu.dimension_semantics<parallel>, #tpu.dimension_semantics<arbitrary>], iteration_bounds = array<i64: 2, 1>, scalar_prefetch = 0 : i64, scratch_operands = 1 : i64, tpu.core_type = #tpu.core_type<tc>, window_params = [{transform_indices = @transform_0, window_bounds = array<i64: 8, 128>}, {pipeline_mode = #tpu.pipeline_mode<synchronous>, transform_indices = @transform_1, window_bounds = array<i64: 128, 128>}, {pipeline_mode = #tpu.pipeline_mode<synchronous>, transform_indices = @transform_2, window_bounds = array<i64: 1, 128>}, {pipeline_mode = #tpu.pipeline_mode<synchronous>, transform_indices = @transform_3, window_bounds = array<i64: 128, 128>}, {pipeline_mode = #tpu.pipeline_mode<synchronous>, transform_indices = @transform_4, window_bounds = array<i64: 1, 128>}, {transform_indices = @transform_5, window_bounds = array<i64: 8, 128>}]} {
    %c0_i32 = arith.constant 0 : i32
    %0 = arith.cmpi eq, %arg1, %c0_i32 : i32
    %1 = arith.extui %0 : i1 to i32
    %c0_i32_0 = arith.constant 0 : i32
    %2 = arith.cmpi ne, %1, %c0_i32_0 : i32
    scf.if %2 {
      %cst_16 = arith.constant 0.000000e+00 : f32
      %21 = vector.broadcast %cst_16 : f32 to vector<8x128xf32>
      %c0_17 = arith.constant 0 : index
      %c0_18 = arith.constant 0 : index
      %22 = vector.load %arg8[%c0_17, %c0_18] : memref<8x128xf32, #tpu.memory_space<vmem>>, vector<8x128xf32>
      tpu.vector_store %arg8[%c0_17, %c0_18], %21 {strides = array<i32>} : memref<8x128xf32, #tpu.memory_space<vmem>>, vector<8x128xf32>,
    } else {
    }
    %c0 = arith.constant 0 : index
    %c0_1 = arith.constant 0 : index
    %3 = vector.load %arg2[%c0, %c0_1] : memref<8x128xf32, #tpu.memory_space<vmem>>, vector<8x128xf32>
    %4 = arith.truncf %3 : vector<8x128xf32> to vector<8x128xbf16>
    %c0_2 = arith.constant 0 : index
    %c0_3 = arith.constant 0 : index
    %5 = vector.load %arg3[%c0_2, %c0_3] : memref<128x128xbf16, #tpu.memory_space<vmem>>, vector<128x128xbf16>
    %cst = arith.constant dense<0.000000e+00> : vector<8x128xf32>
    %6 = tpu.matmul %4, %5, %cst {dimension_numbers = #tpu.dot_dimension_numbers<[1], [0], [0], [1], [0, 0, 1, 1], [], []>} : vector<8x128xbf16>, vector<128x128xbf16>, vector<8x128xf32> -> vector<8x128xf32>
    %c0_4 = arith.constant 0 : index
    %c0_5 = arith.constant 0 : index
    %7 = vector.load %arg4[%c0_4, %c0_5] : memref<1x128xf32, #tpu.memory_space<vmem>>, vector<1x128xf32>
    %8 = vector.broadcast %7 : vector<1x128xf32> to vector<8x128xf32>
    %9 = arith.addf %6, %8 : vector<8x128xf32>
    %cst_6 = arith.constant 0.000000e+00 : f32
    %10 = vector.broadcast %cst_6 : f32 to vector<8x128xf32>
    %11 = arith.maximumf %9, %10 : vector<8x128xf32>
    %c0_7 = arith.constant 0 : index
    %c0_8 = arith.constant 0 : index
    %12 = vector.load %arg8[%c0_7, %c0_8] : memref<8x128xf32, #tpu.memory_space<vmem>>, vector<8x128xf32>
    %13 = arith.truncf %11 : vector<8x128xf32> to vector<8x128xbf16>
    %c0_9 = arith.constant 0 : index
    %c0_10 = arith.constant 0 : index
    %14 = vector.load %arg5[%c0_9, %c0_10] : memref<128x128xbf16, #tpu.memory_space<vmem>>, vector<128x128xbf16>
    %cst_11 = arith.constant dense<0.000000e+00> : vector<8x128xf32>
    %15 = tpu.matmul %13, %14, %cst_11 {dimension_numbers = #tpu.dot_dimension_numbers<[1], [0], [0], [1], [0, 0, 1, 1], [], []>} : vector<8x128xbf16>, vector<128x128xbf16>, vector<8x128xf32> -> vector<8x128xf32>
    %16 = arith.addf %12, %15 : vector<8x128xf32>
    %c0_12 = arith.constant 0 : index
    %c0_13 = arith.constant 0 : index
    %17 = vector.load %arg8[%c0_12, %c0_13] : memref<8x128xf32, #tpu.memory_space<vmem>>, vector<8x128xf32>
    tpu.vector_store %arg8[%c0_12, %c0_13], %16 {strides = array<i32>} : memref<8x128xf32, #tpu.memory_space<vmem>>, vector<8x128xf32>,
    %c0_i32_14 = arith.constant 0 : i32
    %18 = arith.cmpi eq, %arg1, %c0_i32_14 : i32
    %19 = arith.extui %18 : i1 to i32
    %c0_i32_15 = arith.constant 0 : i32
    %20 = arith.cmpi ne, %19, %c0_i32_15 : i32
    scf.if %20 {
      %c0_16 = arith.constant 0 : index
      %c0_17 = arith.constant 0 : index
      %21 = vector.load %arg8[%c0_16, %c0_17] : memref<8x128xf32, #tpu.memory_space<vmem>>, vector<8x128xf32>
      %c0_18 = arith.constant 0 : index
      %c0_19 = arith.constant 0 : index
      %22 = vector.load %arg6[%c0_18, %c0_19] : memref<1x128xf32, #tpu.memory_space<vmem>>, vector<1x128xf32>
      %23 = vector.broadcast %22 : vector<1x128xf32> to vector<8x128xf32>
      %24 = arith.addf %21, %23 : vector<8x128xf32>
      %25 = arith.addf %24, %3 : vector<8x128xf32>
      %c0_20 = arith.constant 0 : index
      %c0_21 = arith.constant 0 : index
      %26 = vector.load %arg7[%c0_20, %c0_21] : memref<8x128xf32, #tpu.memory_space<vmem>>, vector<8x128xf32>
      tpu.vector_store %arg7[%c0_20, %c0_21], %25 {strides = array<i32>} : memref<8x128xf32, #tpu.memory_space<vmem>>, vector<8x128xf32>,
    } else {
    }
    return
  }
  func.func @transform_0(%arg0: i32, %arg1: i32) -> (i32, i32) {
    %c0_i32 = arith.constant 0 : i32
    %c0_i32_0 = arith.constant 0 : i32
    return %arg0, %c0_i32 : i32, i32
  }
  func.func @transform_1(%arg0: i32, %arg1: i32) -> (i32, i32) {
    %c0_i32 = arith.constant 0 : i32
    %c0_i32_0 = arith.constant 0 : i32
    return %c0_i32, %arg1 : i32, i32
  }
  func.func @transform_2(%arg0: i32, %arg1: i32) -> (i32, i32) {
    %c0_i32 = arith.constant 0 : i32
    %c0_i32_0 = arith.constant 0 : i32
    return %c0_i32, %arg1 : i32, i32
  }
  func.func @transform_3(%arg0: i32, %arg1: i32) -> (i32, i32) {
    %c0_i32 = arith.constant 0 : i32
    %c0_i32_0 = arith.constant 0 : i32
    return %arg1, %c0_i32 : i32, i32
  }
  func.func @transform_4(%arg0: i32, %arg1: i32) -> (i32, i32) {
    %c0_i32 = arith.constant 0 : i32
    %c0_i32_0 = arith.constant 0 : i32
    %c0_i32_1 = arith.constant 0 : i32
    return %c0_i32, %c0_i32_0 : i32, i32
  }
  func.func @transform_5(%arg0: i32, %arg1: i32) -> (i32, i32) {
    %c0_i32 = arith.constant 0 : i32
    %c0_i32_0 = arith.constant 0 : i32
    return %arg0, %c0_i32 : i32, i32
  }
}

</mosaic_0001>

<bundles_post_ra>
// kernel: tpu_custom_call.1
= control target key start
LH: loop header
LB: loop body
LE: loop exit
PB: predicated region body
PF: predicated region fallthrough
CT: control target
= control target key end

     0   :  { %10 = vsyncpa [#allocation4], 0  ;;  %s1181_s0 = inlined_call_operand.hbm [shape: f32[16,128], index: 0, kind: input, shape index: {}]   ;;  %s1182_s1 = inlined_call_operand.hbm [shape: bf16[128,128], index: 1, kind: input, shape index: {}]   ;;  %s1183_s2 = inlined_call_operand.vmem [shape: f32[1,128], index: 2, kind: input, shape index: {}]   ;;  %s1184_s3 = inlined_call_operand.hbm [shape: bf16[128,128], index: 3, kind: input, shape index: {}]   ;;  %s1185_s4 = inlined_call_operand.vmem [shape: f32[1,128], index: 4, kind: input, shape index: {}]   ;;  %s1186_s5 = inlined_call_operand.hbm [shape: f32[16,128], index: 5, kind: output, shape index: {}]  }
   0x1   :  { %12 = vsyncpa [#allocation4 + $0x1], 0 }
   0x2   :  { %13 = vsyncpa [#allocation7], 0 }
   0x3   :  { %14 = vsyncpa [#allocation5], 0 }
   0x4   :  { %16 = vsyncpa [#allocation5 + $0x1], 0  ;;  %s1024_s18 = smov 0   ;;  %s1026_s19 = smov 0  }
   0x5   :  { %s1028_s20 = smov 0   ;;  %s1030_s21 = smov 0  }
   0x6   :  { %s1032_s22 = smov 0   ;;  %s1034_s23 = smov 0  }
   0x7 LB: > { %s627_s24 = sadd.s32 4294967295, %s988_s23   ;;  %p629_p0 = scmp.ge.s32.totalorder %s988_s23, 1  ;;  %s988_s23 = sphi %s1034_s23, %s22_s23   ;;  %s984_s22 = sphi %s1032_s22, %s1196_s22   ;;  %s980_s21 = sphi %s1030_s21, %s1195_s21   ;;  %s976_s20 = sphi %s1028_s20, %s1194_s20   ;;  %s972_s19 = sphi %s1026_s19, %s1193_s19   ;;  %s968_s18 = sphi %s1024_s18, %s1192_s18  }
   0x8   : > { %p1058_p1 = scmp.eq.s32.totalorder %s627_s24, 0  ;;  %p190_p2 = scmp.lt.s32.totalorder %s988_s23, 3 }
   0x9   : > { %s203_s28 = sshll.u32 %s1182_s1, 4  ;;  %s990_s30 = smov [#allocation6]   ;;  %s204_s28 = int_to_ptr.hbm [resolvable:$true] %s203_s28 }
   0xa   : > { %p1066_p3 = pnand %p629_p0, %p190_p2  ;;  %s205_s6 = sshll.u32 %s990_s30, 4  ;;  %s206_s6 = int_to_ptr.vmem [resolvable:$true] %s205_s6 }
   0xb   : > { %p633_p6 = scmp.ge.s32.totalorder %s988_s23, 2  ;;  %s226_s9 = sshll.u32 %s1184_s3, 4  ;;  %s227_s9 = int_to_ptr.hbm [resolvable:$true] %s226_s9 }
   0xc   : > { %p737_p4 = pneg %p1066_p3  ;;  %s991_s10 = smov 64  }
   0xd   : > { %s992_s11 = smov 4   ;;  %s993_s12 = smov [#allocation8]  }
   0xe   : > { %p738_p5 = pnand %p737_p4, %p1058_p1  ;;  %s228_s13 = sshll.u32 %s993_s12, 4  ;;  %s229_s13 = int_to_ptr.vmem [resolvable:$true] %s228_s13 }
   0xf   : > { %s34_s14 = sadd.s32 1, %s984_s22  ;;  %s628_s15 = sadd.s32 4294967294, %s988_s23  }
  0x10   : > { %740 = dma.hbm_to_vmem [thread:$0]  (!%p738_p5), %s204_s28, 1024, %s206_s6, [#allocation7], %s991_s10, %s991_s10, %s992_s11  }
  0x11   : > { %743 = dma.hbm_to_vmem [thread:$0]  (!%p738_p5), %s227_s9, 1024, %s229_s13, [#allocation7], %s991_s10, %s991_s10, %s992_s11  }
  0x12   : > { %p36_p7 = scmp.ge.s32.totalorder %s34_s14, 2  ;;  %s41_s16 = sadd.s32 1, %s976_s20 }
  0x13   : > { %p48_p8 = scmp.ne.s32.totalorder %s976_s20, %s972_s19  ;;  %p49_p9 = scmp.eq.s32.totalorder %s988_s23, 0 }
  0x14   : > { %s1198_s14 = smov (%p36_p7, %s34_s14), 0  ;;  %p54_p10 = scmp.ne.s32.totalorder %s972_s19, %s968_s18 }
  0x15   : > { %s38_s17 = ssub.s32 %s984_s22, %s1198_s14  ;;  %p177_p11 = scmp.eq.s32.totalorder %s627_s24, 1 }
  0x16   : > { %p39_p12 = scmp.eq.s32.totalorder %s38_s17, 0  ;;  %p1094_p13 = por %p1058_p1, %p54_p10 }
  0x17   : > { %p1098_p0 = por %p177_p11, %p48_p8  ;;  %p183_p2 = scmp.eq.s32.totalorder %s628_s15, 1 }
  0x18   : > { %s1103_s28 = scalar_select %p39_p12, %s976_s20, %s41_s16  }
  0x19   : > { %p50_p4 = por %p49_p9, %p48_p8  ;;  %p1105_p5 = por %p183_p2, %p54_p10 }
  0x1a   : > { %s245_s6 = sand.u32 1, %s976_s20   ;;  %s635_s24 = sshll.u32 %s984_s22, 3 }
  0x1b   : > { %p754_p7 = scmp.lt.s32.totalorder %s988_s23, 2  ;;  %s634_s7 = sshll.u32 %s245_s6, 3 }
  0x1c   : > { %s253_s10 = scalar_lea.hbm %s1181_s0, %s635_s24  ;;  %s249_s12 = scalar_lea.vmem [#allocation3], %s634_s7 }
  0x1d   : > { %s255_s11 = sshll.u32 %s253_s10, 4  ;;  %s257_s13 = sshll.u32 %s249_s12, 4  ;;  %s256_s11 = int_to_ptr.hbm [resolvable:$true] %s255_s11  ;;  %s258_s13 = int_to_ptr.vmem [resolvable:$true] %s257_s13 }
  0x1e   : > { %p745_p11 = pnand %p754_p7, %p50_p4  ;;  %s246_s15 = scalar_lea.sflag [#allocation4], %s245_s6 }
  0x1f   : > { %266 = sbr.rel (%p1066_p3) target bundleno = 337 (0x151), region = 40  ;;  %s1118_s16 = sand.u32 (!%p1066_p3), 1, %s972_s19  }
  0x20   : > { %747 = dma.hbm_to_vmem [thread:$0]  (!%p745_p11), %s256_s11, 128, %s258_s13, %s246_s15  }
  0x21   : > { %s637_s17 = sshll.u32 (!%p1066_p3), %s1118_s16, 3  ;;  %s269_s24 = scalar_lea.sflag (!%p1066_p3), [#allocation4], %s1118_s16 }
  0x22   : > { %s1124_s7 = scalar_lea.vmem (!%p1066_p3), [#allocation3], %s637_s17 }
  0x24   : > { %955 = dma.done.wait (%p1094_p13), %s269_s24, 128  }
  0x25   : > { %957 = vsyncadd (%p1094_p13), %s269_s24, 4294967168 }
  0x26   : > { %959 = dma.done.wait (%p1058_p1), [#allocation7], 2048  }
  0x27   : > { %961 = vsyncadd (%p1058_p1), [#allocation7], 4294965248  ;;  %v716_v0 = vld [vmem:[#allocation6 + $0x38] sm:$0xff]  ;;  %v715_v1 = vld [vmem:[#allocation6 + $0x30] sm:$0xff]  ;;  %s706_s26 = sshll.u32 %s980_s21, 3  ;;  %s312_s12 = scalar_lea.vmem [#allocation9], %s637_s17 }
  0x28   : > { %392 = vmatpush.bf16.msra.mxu0 %v716_v0  ;;  %v724_v2 = vld [vmem:[#allocation8 + $0x38] sm:$0xff]  ;;  %v723_v3 = vld [vmem:[#allocation8 + $0x30] sm:$0xff]  ;;  %v714_v4 = vld [vmem:[#allocation6 + $0x28] sm:$0xff]  ;;  %s509_s11 = scalar_lea.hbm %s1186_s5, %s706_s26  ;;  %s511_s13 = sshll.u32 %s312_s12, 4  ;;  %s512_s13 = int_to_ptr.vmem [resolvable:$true] %s511_s13 }
  0x29   : > { %472 = vmatpush.bf16.msra.mxu1 %v724_v2  ;;  %v722_v5 = vld [vmem:[#allocation8 + $0x28] sm:$0xff]  ;;  %v713_v6 = vld [vmem:[#allocation6 + $0x20] sm:$0xff]  ;;  %v712_v8 = vld [vmem:[#allocation6 + $0x18] sm:$0xff]  ;;  %s513_s15 = sshll.u32 %s509_s11, 4  ;;  %s499_s21 = scalar_lea.sflag [#allocation5], %s1118_s16  ;;  %s514_s15 = int_to_ptr.hbm [resolvable:$true] %s513_s15 }
  0x2a   : > { %v721_v7 = vld [vmem:[#allocation8 + $0x20] sm:$0xff]  ;;  %v720_v9 = vld [vmem:[#allocation8 + $0x18] sm:$0xff]  ;;  %v711_v10 = vld [vmem:[#allocation6 + $0x10] sm:$0xff]  ;;  %s916_s24 = sshra.s32 %s514_s15, 4  ;;  %s922_s26 = scalar_lea.hbm %s1186_s5, 16  ;;  %s917_s24 = int_to_ptr.hbm [resolvable:$true] %s916_s24 }
  0x2b   : > { %v719_v11 = vld [vmem:[#allocation8 + $0x10] sm:$0xff]  ;;  %v710_v12 = vld [vmem:[#allocation6 + $0x8] sm:$0xff]  ;;  %v709_v13 = vld [vmem:[#allocation6] sm:$0xff]  ;;  %p923_p9 = scmp.lt.s32.totalorder %s917_s24, %s1186_s5 }
  0x2c   : > { %393 = vmatpush.bf16.msra.mxu0 %v715_v1  ;;  %v322_v14 = vld [vmem:[%s1124_s7] sm:$0xff]  ;;  %v718_v16 = vld [vmem:[#allocation8 + $0x8] sm:$0xff]  ;;  %v717_v17 = vld [vmem:[#allocation8] sm:$0xff]  ;;  %s918_s7 = scalar_lea.hbm %s917_s24, 8 }
  0x2d   : > { %473 = vmatpush.bf16.msra.mxu1 %v723_v3  ;;  %v323_v15 = vpack.c.bf16 %v322_v14, %v322_v14  ;;  %v810_v18 = vld [vmem:[%s1183_s2] ss:$0 sm:$0xff]  ;;  %p919_p1 = scmp.ne.s32.totalorder %s917_s24, %s918_s7  ;;  %p924_p10 = scmp.lt.s32.totalorder %s922_s26, %s918_s7 }
  0x2e   : > { %v811_v24 = vld [vmem:[%s1185_s4] ss:$0 sm:$0xff] }
  0x2f   : > { %p920_p3 = pnand %p919_p1, %p1098_p0  ;;  %p925_p12 = por %p924_p10, %p923_p9 }
  0x30   : > { %394 = vmatpush.bf16.msra.mxu0 %v714_v4 }
  0x31   : > { %474 = vmatpush.bf16.msra.mxu1 %v722_v5  ;;  %p921_p8 = pneg %p920_p3 }
  0x33   : > { %p926_p13 = pnand %p925_p12, %p921_p8 }
  0x34   : > { %395 = vmatpush.bf16.msra.mxu0 %v713_v6 }
  0x35   : > { %475 = vmatpush.bf16.msra.mxu1 %v721_v7 }
  0x38   : > { %396 = vmatpush.bf16.msra.mxu0 %v712_v8 }
  0x39   : > { %476 = vmatpush.bf16.msra.mxu1 %v720_v9 }
  0x3c   : > { %397 = vmatpush.bf16.msra.mxu0 %v711_v10 }
  0x3d   : > { %477 = vmatpush.bf16.msra.mxu1 %v719_v11 }
  0x40   : > { %398 = vmatpush.bf16.msra.mxu0 %v710_v12 }
  0x41   : > { %478 = vmatpush.bf16.msra.mxu1 %v718_v16 }
  0x44   : > { %399 = vmatpush.bf16.msra.mxu0 %v709_v13 }
  0x45   : > { %479 = vmatpush.bf16.msra.mxu1 %v717_v17 }
  0x47   : > { %400 = vmatmul.bf16.vlgmr.msra.gmra.mxu0 %v323_v15 }
  0xc4   : > { %v401_v19 = vpop.f32.mrf.mxu0 }
  0xc5   : > { %v402_v20 = vadd.f32 %v810_v18, %v401_v19 }
  0xc7   : > { %v405_v21 = vmax.f32 %v402_v20, 0.0 }
  0xc9   : > { %v407_v22 = vpack.c.bf16 %v405_v21, %v405_v21 }
  0xcb   : > { %480 = vmatmul.bf16.vlgmr.msra.gmra.mxu1 %v407_v22 }
  0xcc   : > { %v403_v23 = vpop.f32.mrf.mxu0 }
 0x148   : > { %v481_v25 = vpop.f32.mrf.mxu1 }
 0x149   : > { %v495_v26 = vadd.f32 %v811_v24, %v481_v25 }
 0x14b   : > { %v496_v27 = vadd.f32 %v495_v26, %v322_v14 }
 0x14d   : > { %497 = vst [vmem:[%s312_s12] sm:$0xff] %v496_v27 }
 0x14e   : > { %929 = shalt.err (!%p926_p13)
}
 0x14f   : > { %735 = dma.vmem_to_hbm [thread:$0]  (%p1098_p0), %s512_s13, 128, %s514_s15, %s499_s21  }
 0x150   : > { %v483_v28 = vpop.f32.mrf.mxu1 }
 0x151 PF: > { %s525_s16 = sand.u32 1, %s968_s18   ;;  %p749_p2 = pnand %p633_p6, %p1105_p5 }
 0x152   : > { %s526_s8 = scalar_lea.sflag [#allocation5], %s525_s16 }
 0x153   : > { %p750_p4 = pneg %p749_p2 }
 0x155   : > { %963 = dma.done.wait (%p750_p4), %s526_s8, 128  }
 0x156   : > { %965 = vsyncadd (%p750_p4), %s526_s8, 4294967168  ;;  %s22_s23 = sadd.s32 1, %s988_s23   ;;  %s1192_s18 = smov %s972_s19 }
 0x157   : > { %p19_p7 = scmp.ge.s32.totalorder %s22_s23, 4   ;;  %s1193_s19 = smov %s976_s20 }
 0x158   : > { %s1194_s20 = smov %s1103_s28  ;;  %s1195_s21 = smov %s984_s22 }
 0x159   : > { %s1196_s22 = smov %s1198_s14  ;;  %21 = sbr.rel (!%p19_p7) target bundleno = 7 (0x7), region = 106 }
 0x15e   :  { %532 = vsyncpa [#allocation4], 1 }
 0x15f   :  { %534 = vsyncpa [#allocation4 + $0x1], 1 }
 0x160   :  { %535 = vsyncpa [#allocation7], 1 }
 0x161   :  { %536 = vsyncpa [#allocation5], 1 }
 0x162   :  { %538 = vsyncpa [#allocation5 + $0x1], 1 }

</bundles_post_ra>
